<compile_context>
chip_gen: v7x
topology: tpu7x:2x2x1
jax: 0.10.0
libtpu: 0.0.40
codegen_flags: <defaults>
</compile_context>

<pallas_src>
import functools
import math

import jax
import jax.numpy as jnp
from jax.experimental import pallas as pl
from jax.experimental.pallas import tpu as pltpu

D_MODEL = 512
N_HEAD = 4
LN_EPS = 1e-10                      # matches the custom LayerNorm in the module
VMEM_LIMIT = 48 * 1024 * 1024       # safe on v5e/v6e (128 MiB phys) and v7x (64 MiB/TC)


def _round_up(a, b):
    return (a + b - 1) // b * b


def _sublane(dtype):
    # minimal second-to-last tile dim; sub-32-bit dtypes pack along sublanes
    return {4: 8, 2: 16, 1: 32}[jnp.dtype(dtype).itemsize]


# ---------------------------------------------------------------------------
# Fused residual-add + LayerNorm (normalized over the last axis = lanes)
# ---------------------------------------------------------------------------
def _add_layernorm_kernel(x_ref, res_ref, gamma_ref, beta_ref, o_ref, *, eps):
    x = x_ref[...].astype(jnp.float32) + res_ref[...].astype(jnp.float32)
    d = x.shape[-1]
    mean = jnp.sum(x, axis=-1, keepdims=True) * (1.0 / d)
    xc = x - mean
    var = jnp.sum(xc * xc, axis=-1, keepdims=True) * (1.0 / d)   # unbiased=False
    out = xc * jax.lax.rsqrt(var + eps)
    gamma = gamma_ref[...].astype(jnp.float32)
    beta = beta_ref[...].astype(jnp.float32)
    o_ref[...] = (gamma * out + beta).astype(o_ref.dtype)


def add_layer_norm(x, residual, gamma, beta, eps=LN_EPS, max_block_rows=1024):
    """LayerNorm(x + residual) over last axis. x, residual: (..., d)."""
    orig_shape = x.shape
    d = orig_shape[-1]
    x2 = x.reshape(-1, d)
    r2 = residual.reshape(-1, d)
    rows = x2.shape[0]

    sub = _sublane(x2.dtype)
    block_rows = min(max_block_rows, _round_up(rows, sub))
    padded = _round_up(rows, block_rows)
    if padded != rows:                       # pad tail instead of asserting divisibility
        x2 = jnp.pad(x2, ((0, padded - rows), (0, 0)))
        r2 = jnp.pad(r2, ((0, padded - rows), (0, 0)))

    out = pl.pallas_call(
        functools.partial(_add_layernorm_kernel, eps=eps),
        out_shape=jax.ShapeDtypeStruct((padded, d), x.dtype),
        grid_spec=pltpu.PrefetchScalarGridSpec(
            num_scalar_prefetch=0,
            grid=(padded // block_rows,),
            in_specs=[
                pl.BlockSpec((block_rows, d), lambda i: (i, 0)),
                pl.BlockSpec((block_rows, d), lambda i: (i, 0)),
                pl.BlockSpec((1, d), lambda i: (0, 0)),
                pl.BlockSpec((1, d), lambda i: (0, 0)),
            ],
            out_specs=pl.BlockSpec((block_rows, d), lambda i: (i, 0)),
        ),
        compiler_params=pltpu.CompilerParams(
            dimension_semantics=("parallel",),
            vmem_limit_bytes=VMEM_LIMIT),
    )(x2, r2, gamma.reshape(1, d), beta.reshape(1, d))
    return out[:rows].reshape(orig_shape)


# ---------------------------------------------------------------------------
# Tiled matmul + bias (+ optional fused ReLU epilogue)  — nn.Linear
# ---------------------------------------------------------------------------
def _linear_kernel(x_ref, w_ref, b_ref, o_ref, acc_ref, *, activation):
    k = pl.program_id(2)

    @pl.when(k == 0)
    def _():
        acc_ref[...] = jnp.zeros_like(acc_ref)

    acc_ref[...] += jnp.dot(x_ref[...], w_ref[...],
                            preferred_element_type=jnp.float32)

    @pl.when(k == pl.num_programs(2) - 1)
    def _():
        out = acc_ref[...] + b_ref[...].astype(jnp.float32)
        if activation == "relu":
            out = jnp.maximum(out, 0.0)
        o_ref[...] = out.astype(o_ref.dtype)


def linear(x, w, b, activation=None, tm=512, tn=512, tk=512):
    """x: (..., K) @ w: (K, N) + b: (N,)."""
    orig_shape = x.shape
    K = orig_shape[-1]
    N = w.shape[1]
    x2 = x.reshape(-1, K)
    M = x2.shape[0]

    sub = _sublane(x2.dtype)
    tm = min(tm, _round_up(M, sub))
    tn = tn if N % tn == 0 else N
    tk = tk if K % tk == 0 else K

    Mp = _round_up(M, tm)
    if Mp != M:
        x2 = jnp.pad(x2, ((0, Mp - M), (0, 0)))

    out = pl.pallas_call(
        functools.partial(_linear_kernel, activation=activation),
        out_shape=jax.ShapeDtypeStruct((Mp, N), x.dtype),
        grid_spec=pltpu.PrefetchScalarGridSpec(
            num_scalar_prefetch=0,
            grid=(Mp // tm, N // tn, K // tk),
            in_specs=[
                pl.BlockSpec((tm, tk), lambda i, j, k: (i, k)),
                pl.BlockSpec((tk, tn), lambda i, j, k: (k, j)),
                pl.BlockSpec((1, tn), lambda i, j, k: (0, j)),
            ],
            out_specs=pl.BlockSpec((tm, tn), lambda i, j, k: (i, j)),
            scratch_shapes=[pltpu.VMEM((tm, tn), jnp.float32)],
        ),
        compiler_params=pltpu.CompilerParams(
            dimension_semantics=("parallel", "parallel", "arbitrary"),
            vmem_limit_bytes=VMEM_LIMIT),
    )(x2, w, b.reshape(1, N))
    return out[:M].reshape(orig_shape[:-1] + (N,))


# ---------------------------------------------------------------------------
# Per-(batch, head) softmax attention core: softmax(q k^T / sqrt(d)) v
# ---------------------------------------------------------------------------
def _attention_kernel(q_ref, k_ref, v_ref, o_ref, *, scale):
    q = q_ref[...].astype(jnp.float32)   # (1, S, Dh)
    k = k_ref[...].astype(jnp.float32)
    v = v_ref[...].astype(jnp.float32)
    s = jnp.einsum("bqd,bkd->bqk", q, k,
                   preferred_element_type=jnp.float32) * scale
    m = jnp.max(s, axis=-1, keepdims=True)
    p = jnp.exp(s - m)
    p = p / jnp.sum(p, axis=-1, keepdims=True)
    o = jnp.einsum("bqk,bkd->bqd", p, v, preferred_element_type=jnp.float32)
    o_ref[...] = o.astype(o_ref.dtype)


def attention_core(q, k, v):
    """q, k, v: (B, H, S, Dh) -> (B, H, S, Dh)."""
    B, H, S, Dh = q.shape
    qf, kf, vf = (t.reshape(B * H, S, Dh) for t in (q, k, v))
    spec = pl.BlockSpec((1, S, Dh), lambda i: (i, 0, 0))
    out = pl.pallas_call(
        functools.partial(_attention_kernel, scale=1.0 / math.sqrt(Dh)),
        out_shape=jax.ShapeDtypeStruct((B * H, S, Dh), q.dtype),
        grid_spec=pltpu.PrefetchScalarGridSpec(
            num_scalar_prefetch=0,
            grid=(B * H,),
            in_specs=[spec, spec, spec],
            out_specs=spec,
        ),
        compiler_params=pltpu.CompilerParams(
            dimension_semantics=("parallel",)),
    )(qf, kf, vf)
    return out.reshape(B, H, S, Dh)


# ---------------------------------------------------------------------------
# Encoder forward (Pallas-backed)
# ---------------------------------------------------------------------------
def multi_head_attention(q_in, k_in, v_in, p, n_head, mask=None):
    B, T, Dm = q_in.shape
    n_d = Dm // n_head
    q = linear(q_in, p["w_q"], p["b_q"])
    k = linear(k_in, p["w_k"], p["b_k"])
    v = linear(v_in, p["w_v"], p["b_v"])

    def split_heads(t):
        return t.reshape(B, T, n_head, n_d).transpose(0, 2, 1, 3)

    if mask is not None:
        # TODO(synk): masked_fill(mask==0, -1000) path not implemented in the Pallas
        # attention kernel; the demo follows the PyTorch `mask is None` branch.
        raise NotImplementedError("attention mask not supported")

    ctx = attention_core(split_heads(q), split_heads(k), split_heads(v))
    ctx = ctx.transpose(0, 2, 1, 3).reshape(B, T, Dm)
    return linear(ctx, p["w_combine"], p["b_combine"])


def encoder_layer(x, p, mask=None):
    res = x
    x = multi_head_attention(x, x, x, p["attn"], N_HEAD, mask)
    # dropout: identity at inference
    x = add_layer_norm(x, res, p["norm1_gamma"], p["norm1_beta"])
    res = x
    x = linear(x, p["fc1_w"], p["fc1_b"], activation="relu")
    x = linear(x, p["fc2_w"], p["fc2_b"])
    x = add_layer_norm(x, res, p["norm2_gamma"], p["norm2_beta"])
    return x


def make_positional_encoding(max_len, d_model, dtype=jnp.float32):
    pos = jnp.arange(max_len, dtype=jnp.float32)[:, None]
    two_i = jnp.arange(0, d_model, 2, dtype=jnp.float32)
    angle = pos / jnp.power(10000.0, two_i / d_model)
    enc = jnp.zeros((max_len, d_model), jnp.float32)
    enc = enc.at[:, 0::2].set(jnp.sin(angle))
    enc = enc.at[:, 1::2].set(jnp.cos(angle))
    return enc.astype(dtype)


def encoder_forward(token_ids, params, s_mask=None):
    # TransformerEmbedding: token gather + positional encoding (dropout = identity).
    # TODO(synk): embedding gather left to XLA (advanced indexing); a Pallas
    # pl.Element row-gather adds nothing at these sizes.
    x = params["emb"][token_ids] + params["pos"][: token_ids.shape[1]][None, :, :]
    for lp in params["layers"]:
        x = encoder_layer(x, lp, s_mask)
    return x


# ---------------------------------------------------------------------------
# Parameters + pure-JAX reference (same math as the PyTorch module)
# ---------------------------------------------------------------------------
def init_params(key, vocab_size, max_len, d_model, ffn_hidden, n_layer,
                dtype=jnp.float32):
    def lin_init(k, fan_in, fan_out):
        kw, kb = jax.random.split(k)
        s = 1.0 / math.sqrt(fan_in)
        w = jax.random.uniform(kw, (fan_in, fan_out), dtype, -s, s)
        b = jax.random.uniform(kb, (fan_out,), dtype, -s, s)
        return w, b

    keys = jax.random.split(key, n_layer + 1)
    emb = 0.02 * jax.random.normal(keys[0], (vocab_size, d_model), dtype)
    emb = emb.at[1].set(0.0)                      # padding_idx=1
    layers = []
    for li in range(n_layer):
        ks = jax.random.split(keys[li + 1], 6)
        wq, bq = lin_init(ks[0], d_model, d_model)
        wk, bk = lin_init(ks[1], d_model, d_model)
        wv, bv = lin_init(ks[2], d_model, d_model)
        wc, bc = lin_init(ks[3], d_model, d_model)
        w1, b1 = lin_init(ks[4], d_model, ffn_hidden)
        w2, b2 = lin_init(ks[5], ffn_hidden, d_model)
        layers.append(dict(
            attn=dict(w_q=wq, b_q=bq, w_k=wk, b_k=bk, w_v=wv, b_v=bv,
                      w_combine=wc, b_combine=bc),
            norm1_gamma=jnp.ones((d_model,), dtype),
            norm1_beta=jnp.zeros((d_model,), dtype),
            fc1_w=w1, fc1_b=b1, fc2_w=w2, fc2_b=b2,
            norm2_gamma=jnp.ones((d_model,), dtype),
            norm2_beta=jnp.zeros((d_model,), dtype),
        ))
    return dict(emb=emb,
                pos=make_positional_encoding(max_len, d_model, dtype),
                layers=layers)


def _ref_layernorm(x, gamma, beta, eps=LN_EPS):
    mean = jnp.mean(x, axis=-1, keepdims=True)
    var = jnp.mean((x - mean) ** 2, axis=-1, keepdims=True)
    return gamma * ((x - mean) / jnp.sqrt(var + eps)) + beta


def _ref_mha(x, p, n_head):
    B, T, Dm = x.shape
    n_d = Dm // n_head
    q = x @ p["w_q"] + p["b_q"]
    k = x @ p["w_k"] + p["b_k"]
    v = x @ p["w_v"] + p["b_v"]

    def split(t):
        return t.reshape(B, T, n_head, n_d).transpose(0, 2, 1, 3)

    q, k, v = split(q), split(k), split(v)
    s = (q @ k.transpose(0, 1, 3, 2)) / math.sqrt(n_d)
    ctx = jax.nn.softmax(s, axis=-1) @ v
    ctx = ctx.transpose(0, 2, 1, 3).reshape(B, T, Dm)
    return ctx @ p["w_combine"] + p["b_combine"]


def _ref_encoder(token_ids, params):
    x = params["emb"][token_ids] + params["pos"][: token_ids.shape[1]][None]
    for p in params["layers"]:
        res = x
        x = _ref_mha(x, p["attn"], N_HEAD)
        x = _ref_layernorm(x + res, p["norm1_gamma"], p["norm1_beta"])
        res = x
        x = jnp.maximum(x @ p["fc1_w"] + p["fc1_b"], 0.0)
        x = x @ p["fc2_w"] + p["fc2_b"]
        x = _ref_layernorm(x + res, p["norm2_gamma"], p["norm2_beta"])
    return x


if __name__ == "__main__":
    batch, seq = 2, 8
    vocab_size, max_len = 100, 32
    ffn_hidden, n_layer = 1024, 2

    key = jax.random.PRNGKey(0)
    k_params, k_tokens = jax.random.split(key)
    params = init_params(k_params, vocab_size, max_len, D_MODEL,
                         ffn_hidden, n_layer)
    token_ids = jax.random.randint(k_tokens, (batch, seq), 0, vocab_size)

    out = encoder_forward(token_ids, params, s_mask=None)
    out = jax.block_until_ready(out)

    ref = _ref_encoder(token_ids, params)
    assert out.shape == (batch, seq, D_MODEL)
    # tolerance covers default-precision f32 matmul differences (XLA vs MXU passes)
    assert jnp.allclose(out, ref, atol=2e-2, rtol=2e-2), "mismatch vs reference"

    print("KERNEL_OK")
</pallas_src>

<mosaic_0001>
module attributes {stable_mosaic.version = 11 : i64} {
  func.func @_linear_kernel(%arg0: i32, %arg1: i32, %arg2: i32, %arg3: memref<16x512xf32, #tpu.memory_space<vmem>>, %arg4: memref<512x512xf32, #tpu.memory_space<vmem>>, %arg5: memref<1x512xf32, #tpu.memory_space<vmem>>, %arg6: memref<16x512xf32, #tpu.memory_space<vmem>>, %arg7: memref<16x512xf32, #tpu.memory_space<vmem>>) attributes {dimension_semantics = [#tpu.dimension_semantics<parallel>, #tpu.dimension_semantics<parallel>, #tpu.dimension_semantics<arbitrary>], iteration_bounds = array<i64: 1, 1, 1>, scalar_prefetch = 0 : i64, scratch_operands = 1 : i64, tpu.core_type = #tpu.core_type<tc>, window_params = [{transform_indices = @transform_0, window_bounds = array<i64: 16, 512>}, {transform_indices = @transform_1, window_bounds = array<i64: 512, 512>}, {transform_indices = @transform_2, window_bounds = array<i64: 1, 512>}, {transform_indices = @transform_3, window_bounds = array<i64: 16, 512>}]} {
    %c0_i32 = arith.constant 0 : i32
    %0 = arith.cmpi eq, %arg2, %c0_i32 : i32
    %1 = arith.extui %0 : i1 to i32
    %c0_i32_0 = arith.constant 0 : i32
    %2 = arith.cmpi ne, %1, %c0_i32_0 : i32
    scf.if %2 {
      %cst_10 = arith.constant 0.000000e+00 : f32
      %12 = vector.broadcast %cst_10 : f32 to vector<16x512xf32>
      %c0_11 = arith.constant 0 : index
      %c0_12 = arith.constant 0 : index
      %13 = vector.load %arg7[%c0_11, %c0_12] : memref<16x512xf32, #tpu.memory_space<vmem>>, vector<16x512xf32>
      tpu.vector_store %arg7[%c0_11, %c0_12], %12 {strides = array<i32>} : memref<16x512xf32, #tpu.memory_space<vmem>>, vector<16x512xf32>,
    } else {
    }
    %c0 = arith.constant 0 : index
    %c0_1 = arith.constant 0 : index
    %3 = vector.load %arg7[%c0, %c0_1] : memref<16x512xf32, #tpu.memory_space<vmem>>, vector<16x512xf32>
    %c0_2 = arith.constant 0 : index
    %c0_3 = arith.constant 0 : index
    %4 = vector.load %arg3[%c0_2, %c0_3] : memref<16x512xf32, #tpu.memory_space<vmem>>, vector<16x512xf32>
    %c0_4 = arith.constant 0 : index
    %c0_5 = arith.constant 0 : index
    %5 = vector.load %arg4[%c0_4, %c0_5] : memref<512x512xf32, #tpu.memory_space<vmem>>, vector<512x512xf32>
    %cst = arith.constant dense<0.000000e+00> : vector<16x512xf32>
    %6 = tpu.matmul %4, %5, %cst {dimension_numbers = #tpu.dot_dimension_numbers<[1], [0], [0], [1], [0, 0, 1, 1], [], []>} : vector<16x512xf32>, vector<512x512xf32>, vector<16x512xf32> -> vector<16x512xf32>
    %7 = arith.addf %3, %6 : vector<16x512xf32>
    %c0_6 = arith.constant 0 : index
    %c0_7 = arith.constant 0 : index
    %8 = vector.load %arg7[%c0_6, %c0_7] : memref<16x512xf32, #tpu.memory_space<vmem>>, vector<16x512xf32>
    tpu.vector_store %arg7[%c0_6, %c0_7], %7 {strides = array<i32>} : memref<16x512xf32, #tpu.memory_space<vmem>>, vector<16x512xf32>,
    %c0_i32_8 = arith.constant 0 : i32
    %9 = arith.cmpi eq, %arg2, %c0_i32_8 : i32
    %10 = arith.extui %9 : i1 to i32
    %c0_i32_9 = arith.constant 0 : i32
    %11 = arith.cmpi ne, %10, %c0_i32_9 : i32
    scf.if %11 {
      %c0_10 = arith.constant 0 : index
      %c0_11 = arith.constant 0 : index
      %12 = vector.load %arg7[%c0_10, %c0_11] : memref<16x512xf32, #tpu.memory_space<vmem>>, vector<16x512xf32>
      %c0_12 = arith.constant 0 : index
      %c0_13 = arith.constant 0 : index
      %13 = vector.load %arg5[%c0_12, %c0_13] : memref<1x512xf32, #tpu.memory_space<vmem>>, vector<1x512xf32>
      %14 = vector.broadcast %13 : vector<1x512xf32> to vector<16x512xf32>
      %15 = arith.addf %12, %14 : vector<16x512xf32>
      %c0_14 = arith.constant 0 : index
      %c0_15 = arith.constant 0 : index
      %16 = vector.load %arg6[%c0_14, %c0_15] : memref<16x512xf32, #tpu.memory_space<vmem>>, vector<16x512xf32>
      tpu.vector_store %arg6[%c0_14, %c0_15], %15 {strides = array<i32>} : memref<16x512xf32, #tpu.memory_space<vmem>>, vector<16x512xf32>,
    } else {
    }
    return
  }
  func.func @transform_0(%arg0: i32, %arg1: i32, %arg2: i32) -> (i32, i32) {
    %c0_i32 = arith.constant 0 : i32
    return %arg0, %arg2 : i32, i32
  }
  func.func @transform_1(%arg0: i32, %arg1: i32, %arg2: i32) -> (i32, i32) {
    %c0_i32 = arith.constant 0 : i32
    return %arg2, %arg1 : i32, i32
  }
  func.func @transform_2(%arg0: i32, %arg1: i32, %arg2: i32) -> (i32, i32) {
    %c0_i32 = arith.constant 0 : i32
    %c0_i32_0 = arith.constant 0 : i32
    return %c0_i32, %arg1 : i32, i32
  }
  func.func @transform_3(%arg0: i32, %arg1: i32, %arg2: i32) -> (i32, i32) {
    %c0_i32 = arith.constant 0 : i32
    return %arg0, %arg1 : i32, i32
  }
}

</mosaic_0001>

<bundles_post_ra>
// kernel: tpu_custom_call.1
= control target key start
LH: loop header
LB: loop body
LE: loop exit
PB: predicated region body
PF: predicated region fallthrough
CT: control target
= control target key end

     0   :  { %8 = vsyncpa [#allocation4], 0  ;;  %s1132_s0 = inlined_call_operand.hbm [shape: f32[16,512], index: 0, kind: input, shape index: {}]   ;;  %s1133_s1 = inlined_call_operand.hbm [shape: f32[512,512], index: 1, kind: input, shape index: {}]   ;;  %s1134_s2 = inlined_call_operand.vmem [shape: f32[1,512], index: 2, kind: input, shape index: {}]   ;;  %s1135_s3 = inlined_call_operand.hbm [shape: f32[16,512], index: 3, kind: output, shape index: {}]  }
   0x1   :  { %9 = vsyncpa [#allocation7], 0 }
   0x2   :  { %10 = vsyncpa [#allocation5], 0  ;;  %s1059_s12 = smov [#allocation3]   ;;  %s987_s16 = scalar_lea.hbm %s1132_s0, 1024 }
   0x3   :  { %s16_s13 = sshll.u32 %s1059_s12, 4  ;;  %p988_p0 = scmp.ne.s32.totalorder %s1132_s0, %s987_s16  ;;  %s17_s13 = int_to_ptr.vmem [resolvable:$true] %s16_s13 }
   0x4   :  { %p991_p1 = scmp.lt.u32.totalorder %s987_s16, %s1132_s0 }
   0x6   :  { %p993_p2 = pnand %p991_p1, %p988_p0 }
   0x8   :  { %996 = shalt.err (!%p993_p2)
}
   0x9   :  { %s997_s21 = scalar_lea.vmem %s17_s13, 1024  ;;  %p1002_p4 = scmp.lt.s32.totalorder %s17_s13, %s17_s13 }
   0xa   :  { %p998_p3 = scmp.ne.s32.totalorder %s17_s13, %s997_s21  ;;  %p1003_p5 = scmp.lt.s32.totalorder %s997_s21, %s997_s21 }
   0xc   :  { %p1004_p6 = por %p1003_p5, %p1002_p4 }
   0xe   :  { %p1005_p7 = pnand %p1004_p6, %p998_p3 }
  0x10   :  { %1008 = shalt.err (!%p1005_p7)
}
  0x11   :  { %s1060_s22 = smov 512   ;;  %s1061_s23 = smov 32  }
  0x12   :  { %22 = dma.hbm_to_vmem [thread:$0]  %s1132_s0, 1024, %s17_s13, [#allocation4], %s1060_s22, %s1060_s22, %s1061_s23  }
  0x13   :  { %s1062_s26 = smov [#allocation6]   ;;  %s1009_s30 = scalar_lea.hbm %s1133_s1, 32768 }
  0x14   :  { %s28_s27 = sshll.u32 %s1062_s26, 4  ;;  %p1010_p8 = scmp.ne.s32.totalorder %s1133_s1, %s1009_s30  ;;  %s29_s27 = int_to_ptr.vmem [resolvable:$true] %s28_s27 }
  0x15   :  { %p1013_p9 = scmp.lt.u32.totalorder %s1009_s30, %s1133_s1 }
  0x17   :  { %p1015_p10 = pnand %p1013_p9, %p1010_p8 }
  0x19   :  { %1018 = shalt.err (!%p1015_p10)
}
  0x1a   :  { %s1019_s8 = scalar_lea.vmem %s29_s27, 32768  ;;  %p1024_p12 = scmp.lt.s32.totalorder %s29_s27, %s29_s27 }
  0x1b   :  { %p1020_p11 = scmp.ne.s32.totalorder %s29_s27, %s1019_s8  ;;  %p1025_p13 = scmp.lt.s32.totalorder %s1019_s8, %s1019_s8 }
  0x1d   :  { %p1026_p0 = por %p1025_p13, %p1024_p12 }
  0x1f   :  { %p1027_p1 = pnand %p1026_p0, %p1020_p11 }
  0x21   :  { %1030 = shalt.err (!%p1027_p1)
}
  0x22   :  { %34 = dma.hbm_to_vmem [thread:$0]  %s1133_s1, 32768, %s29_s27, [#allocation7], %s1060_s22, %s1060_s22, %s1061_s23  }
  0x23   :  { %1053 = dma.done.wait [#allocation4], 1024  }
  0x24   :  { %1054 = vsyncadd [#allocation4], 4294966272 }
  0x25   :  { %1055 = dma.done.wait [#allocation7], 32768  }
  0x26   :  { %1056 = vsyncadd [#allocation7], 4294934528  ;;  %v72_v0 = vld [vmem:[#allocation6 + $0x8] sm:$0xff]  ;;  %v74_v2 = vld [vmem:[#allocation6 + $0x18] sm:$0xff] }
  0x27   :  { %v76_v1 = vld [vmem:[#allocation6 + $0x28] sm:$0xff]  ;;  %v78_v4 = vld [vmem:[#allocation6 + $0x38] sm:$0xff]  ;;  %v71_v5 = vld [vmem:[#allocation6] sm:$0xff] }
  0x28   :  { %v718_v3 = vpack.c.bf16 %v76_v1, %v72_v0  ;;  %v75_v6 = vld [vmem:[#allocation6 + $0x20] sm:$0xff]  ;;  %v846_v7 = vpack.c.bf16 %v78_v4, %v74_v2  ;;  %v73_v9 = vld [vmem:[#allocation6 + $0x10] sm:$0xff]  ;;  %v80_v11 = vld [vmem:[#allocation6 + $0x48] sm:$0xff] }
  0x29   :  { %v720_v8 = vpack.c.bf16 %v75_v6, %v71_v5  ;;  %v77_v10 = vld [vmem:[#allocation6 + $0x30] sm:$0xff]  ;;  %v84_v13 = vld [vmem:[#allocation6 + $0x68] sm:$0xff]  ;;  %v82_v14 = vld [vmem:[#allocation6 + $0x58] sm:$0xff] }
  0x2a   :  { %719 = vmatprep.subr.bf16.mxu0 %v718_v3  ;;  %v848_v12 = vpack.c.bf16 %v77_v10, %v73_v9  ;;  %v86_v15 = vld [vmem:[#allocation6 + $0x78] sm:$0xff]  ;;  %847 = vmatprep.subr.bf16.mxu1 %v846_v7  ;;  %v722_v16 = vpack.c.bf16 %v84_v13, %v80_v11  ;;  %v79_v18 = vld [vmem:[#allocation6 + $0x40] sm:$0xff]  ;;  %v81_v20 = vld [vmem:[#allocation6 + $0x50] sm:$0xff] }
  0x2b   :  { %721 = vmatpush1.bf16.msra.mxu0 %v720_v8  ;;  %v850_v17 = vpack.c.bf16 %v86_v15, %v82_v14  ;;  %v83_v19 = vld [vmem:[#allocation6 + $0x60] sm:$0xff]  ;;  %v85_v22 = vld [vmem:[#allocation6 + $0x70] sm:$0xff]  ;;  %v88_v23 = vld [vmem:[#allocation6 + $0x88] sm:$0xff] }
  0x2c   :  { %849 = vmatpush1.bf16.msra.mxu1 %v848_v12  ;;  %v724_v21 = vpack.c.bf16 %v83_v19, %v79_v18  ;;  %v92_v24 = vld [vmem:[#allocation6 + $0xa8] sm:$0xff]  ;;  %723 = vmatprep.subr.bf16.mxu0 %v722_v16  ;;  %v852_v25 = vpack.c.bf16 %v85_v22, %v81_v20  ;;  %v90_v27 = vld [vmem:[#allocation6 + $0x98] sm:$0xff]  ;;  %v87_v29 = vld [vmem:[#allocation6 + $0x80] sm:$0xff] }
  0x2d   :  { %851 = vmatprep.subr.bf16.mxu1 %v850_v17  ;;  %v726_v26 = vpack.c.bf16 %v92_v24, %v88_v23  ;;  %v94_v28 = vld [vmem:[#allocation6 + $0xb8] sm:$0xff]  ;;  %v91_v31 = vld [vmem:[#allocation6 + $0xa0] sm:$0xff]  ;;  %v89_v32 = vld [vmem:[#allocation6 + $0x90] sm:$0xff] }
  0x2e   :  { %v854_v30 = vpack.c.bf16 %v94_v28, %v90_v27  ;;  %v93_v33 = vld [vmem:[#allocation6 + $0xb0] sm:$0xff]  ;;  %v728_v34 = vpack.c.bf16 %v91_v31, %v87_v29  ;;  %v96_v35 = vld [vmem:[#allocation6 + $0xc8] sm:$0xff]  ;;  %v98_v37 = vld [vmem:[#allocation6 + $0xd8] sm:$0xff] }
  0x2f   :  { %725 = vmatpush1.bf16.msra.mxu0 %v724_v21  ;;  %v100_v36 = vld [vmem:[#allocation6 + $0xe8] sm:$0xff]  ;;  %v856_v38 = vpack.c.bf16 %v93_v33, %v89_v32  ;;  %v102_v40 = vld [vmem:[#allocation6 + $0xf8] sm:$0xff]  ;;  %v95_v41 = vld [vmem:[#allocation6 + $0xc0] sm:$0xff] }
  0x30   :  { %853 = vmatpush1.bf16.msra.mxu1 %v852_v25  ;;  %727 = vmatprep.subr.bf16.mxu0 %v726_v26  ;;  %v730_v39 = vpack.c.bf16 %v100_v36, %v96_v35  ;;  %v99_v42 = vld [vmem:[#allocation6 + $0xe0] sm:$0xff]  ;;  %v858_v43 = vpack.c.bf16 %v102_v40, %v98_v37  ;;  %v97_v44 = vld [vmem:[#allocation6 + $0xd0] sm:$0xff]  ;;  %v104_v46 = vld [vmem:[#allocation6 + $0x108] sm:$0xff] }
  0x31   :  { %855 = vmatprep.subr.bf16.mxu1 %v854_v30  ;;  %v101_v45 = vld [vmem:[#allocation6 + $0xf0] sm:$0xff]  ;;  %v108_v47 = vld [vmem:[#allocation6 + $0x128] sm:$0xff]  ;;  %v106_v48 = vld [vmem:[#allocation6 + $0x118] sm:$0xff]  ;;  %v732_v50 = vpack.c.bf16 %v99_v42, %v95_v41 }
  0x32   :  { %v110_v49 = vld [vmem:[#allocation6 + $0x138] sm:$0xff]  ;;  %v860_v51 = vpack.c.bf16 %v101_v45, %v97_v44  ;;  %v734_v52 = vpack.c.bf16 %v108_v47, %v104_v46  ;;  %v103_v53 = vld [vmem:[#allocation6 + $0x100] sm:$0xff]  ;;  %v105_v55 = vld [vmem:[#allocation6 + $0x110] sm:$0xff] }
  0x33   :  { %729 = vmatpush1.bf16.msra.mxu0 %v728_v34  ;;  %v107_v54 = vld [vmem:[#allocation6 + $0x120] sm:$0xff]  ;;  %v862_v56 = vpack.c.bf16 %v110_v49, %v106_v48  ;;  %v109_v57 = vld [vmem:[#allocation6 + $0x130] sm:$0xff]  ;;  %v112_v58 = vld [vmem:[#allocation6 + $0x148] sm:$0xff] }
  0x34   :  { %857 = vmatpush1.bf16.msra.mxu1 %v856_v38  ;;  %731 = vmatprep.subr.bf16.mxu0 %v730_v39  ;;  %v116_v59 = vld [vmem:[#allocation6 + $0x168] sm:$0xff]  ;;  %v114_v60 = vld [vmem:[#allocation6 + $0x158] sm:$0xff]  ;;  %v736_v62 = vpack.c.bf16 %v107_v54, %v103_v53  ;;  %v864_v63 = vpack.c.bf16 %v109_v57, %v105_v55  ;;  %v111_v1 = vld [vmem:[#allocation6 + $0x140] sm:$0xff] }
  0x35   :  { %859 = vmatprep.subr.bf16.mxu1 %v858_v43  ;;  %v118_v61 = vld [vmem:[#allocation6 + $0x178] sm:$0xff]  ;;  %v738_v0 = vpack.c.bf16 %v116_v59, %v112_v58  ;;  %v115_v2 = vld [vmem:[#allocation6 + $0x160] sm:$0xff]  ;;  %v113_v3 = vld [vmem:[#allocation6 + $0x150] sm:$0xff] }
  0x36   :  { %v866_v4 = vpack.c.bf16 %v118_v61, %v114_v60  ;;  %v117_v5 = vld [vmem:[#allocation6 + $0x170] sm:$0xff]  ;;  %v120_v6 = vld [vmem:[#allocation6 + $0x188] sm:$0xff]  ;;  %v122_v8 = vld [vmem:[#allocation6 + $0x198] sm:$0xff]  ;;  %v740_v10 = vpack.c.bf16 %v115_v2, %v111_v1 }
  0x37   :  { %733 = vmatpush1.bf16.msra.mxu0 %v732_v50  ;;  %v124_v7 = vld [vmem:[#allocation6 + $0x1a8] sm:$0xff]  ;;  %v126_v9 = vld [vmem:[#allocation6 + $0x1b8] sm:$0xff]  ;;  %v868_v11 = vpack.c.bf16 %v117_v5, %v113_v3  ;;  %v119_v13 = vld [vmem:[#allocation6 + $0x180] sm:$0xff] }
  0x38   :  { %861 = vmatpush1.bf16.msra.mxu1 %v860_v51  ;;  %735 = vmatprep.subr.bf16.mxu0 %v734_v52  ;;  %v742_v12 = vpack.c.bf16 %v124_v7, %v120_v6  ;;  %v123_v14 = vld [vmem:[#allocation6 + $0x1a0] sm:$0xff]  ;;  %v121_v15 = vld [vmem:[#allocation6 + $0x190] sm:$0xff]  ;;  %v870_v16 = vpack.c.bf16 %v126_v9, %v122_v8  ;;  %v128_v18 = vld [vmem:[#allocation6 + $0x1c8] sm:$0xff] }
  0x39   :  { %863 = vmatprep.subr.bf16.mxu1 %v862_v56  ;;  %v125_v17 = vld [vmem:[#allocation6 + $0x1b0] sm:$0xff]  ;;  %v132_v19 = vld [vmem:[#allocation6 + $0x1e8] sm:$0xff]  ;;  %v130_v20 = vld [vmem:[#allocation6 + $0x1d8] sm:$0xff]  ;;  %v744_v22 = vpack.c.bf16 %v123_v14, %v119_v13 }
  0x3a   :  { %v134_v21 = vld [vmem:[#allocation6 + $0x1f8] sm:$0xff]  ;;  %v872_v23 = vpack.c.bf16 %v125_v17, %v121_v15  ;;  %v746_v24 = vpack.c.bf16 %v132_v19, %v128_v18  ;;  %v127_v25 = vld [vmem:[#allocation6 + $0x1c0] sm:$0xff]  ;;  %v129_v27 = vld [vmem:[#allocation6 + $0x1d0] sm:$0xff] }
  0x3b   :  { %737 = vmatpush1.bf16.msra.mxu0 %v736_v62  ;;  %v131_v26 = vld [vmem:[#allocation6 + $0x1e0] sm:$0xff]  ;;  %v874_v28 = vpack.c.bf16 %v134_v21, %v130_v20  ;;  %v133_v29 = vld [vmem:[#allocation6 + $0x1f0] sm:$0xff]  ;;  %v136_v30 = vld [vmem:[#allocation6 + $0x208] sm:$0xff] }
  0x3c   :  { %865 = vmatpush1.bf16.msra.mxu1 %v864_v63  ;;  %739 = vmatprep.subr.bf16.mxu0 %v738_v0  ;;  %v140_v31 = vld [vmem:[#allocation6 + $0x228] sm:$0xff]  ;;  %v138_v32 = vld [vmem:[#allocation6 + $0x218] sm:$0xff]  ;;  %v748_v34 = vpack.c.bf16 %v131_v26, %v127_v25  ;;  %v876_v35 = vpack.c.bf16 %v133_v29, %v129_v27  ;;  %v135_v37 = vld [vmem:[#allocation6 + $0x200] sm:$0xff] }
  0x3d   :  { %867 = vmatprep.subr.bf16.mxu1 %v866_v4  ;;  %v142_v33 = vld [vmem:[#allocation6 + $0x238] sm:$0xff]  ;;  %v750_v36 = vpack.c.bf16 %v140_v31, %v136_v30  ;;  %v139_v38 = vld [vmem:[#allocation6 + $0x220] sm:$0xff]  ;;  %v137_v39 = vld [vmem:[#allocation6 + $0x210] sm:$0xff] }
  0x3e   :  { %v878_v40 = vpack.c.bf16 %v142_v33, %v138_v32  ;;  %v141_v41 = vld [vmem:[#allocation6 + $0x230] sm:$0xff]  ;;  %v144_v42 = vld [vmem:[#allocation6 + $0x248] sm:$0xff]  ;;  %v146_v44 = vld [vmem:[#allocation6 + $0x258] sm:$0xff]  ;;  %v752_v46 = vpack.c.bf16 %v139_v38, %v135_v37 }
  0x3f   :  { %741 = vmatpush1.bf16.msra.mxu0 %v740_v10  ;;  %v148_v43 = vld [vmem:[#allocation6 + $0x268] sm:$0xff]  ;;  %v150_v45 = vld [vmem:[#allocation6 + $0x278] sm:$0xff]  ;;  %v880_v47 = vpack.c.bf16 %v141_v41, %v137_v39  ;;  %v143_v49 = vld [vmem:[#allocation6 + $0x240] sm:$0xff] }
  0x40   :  { %869 = vmatpush1.bf16.msra.mxu1 %v868_v11  ;;  %743 = vmatprep.subr.bf16.mxu0 %v742_v12  ;;  %v754_v48 = vpack.c.bf16 %v148_v43, %v144_v42  ;;  %v147_v50 = vld [vmem:[#allocation6 + $0x260] sm:$0xff]  ;;  %v145_v51 = vld [vmem:[#allocation6 + $0x250] sm:$0xff]  ;;  %v882_v52 = vpack.c.bf16 %v150_v45, %v146_v44  ;;  %v152_v54 = vld [vmem:[#allocation6 + $0x288] sm:$0xff] }
  0x41   :  { %871 = vmatprep.subr.bf16.mxu1 %v870_v16  ;;  %v149_v53 = vld [vmem:[#allocation6 + $0x270] sm:$0xff]  ;;  %v156_v55 = vld [vmem:[#allocation6 + $0x2a8] sm:$0xff]  ;;  %v154_v56 = vld [vmem:[#allocation6 + $0x298] sm:$0xff]  ;;  %v756_v58 = vpack.c.bf16 %v147_v50, %v143_v49 }
  0x42   :  { %v158_v57 = vld [vmem:[#allocation6 + $0x2b8] sm:$0xff]  ;;  %v884_v59 = vpack.c.bf16 %v149_v53, %v145_v51  ;;  %v758_v60 = vpack.c.bf16 %v156_v55, %v152_v54  ;;  %v151_v61 = vld [vmem:[#allocation6 + $0x280] sm:$0xff]  ;;  %v153_v63 = vld [vmem:[#allocation6 + $0x290] sm:$0xff] }
  0x43   :  { %745 = vmatpush1.bf16.msra.mxu0 %v744_v22  ;;  %v155_v62 = vld [vmem:[#allocation6 + $0x2a0] sm:$0xff]  ;;  %v886_v0 = vpack.c.bf16 %v158_v57, %v154_v56  ;;  %v157_v1 = vld [vmem:[#allocation6 + $0x2b0] sm:$0xff]  ;;  %v160_v2 = vld [vmem:[#allocation6 + $0x2c8] sm:$0xff] }
  0x44   :  { %873 = vmatpush1.bf16.msra.mxu1 %v872_v23  ;;  %747 = vmatprep.subr.bf16.mxu0 %v746_v24  ;;  %v164_v3 = vld [vmem:[#allocation6 + $0x2e8] sm:$0xff]  ;;  %v162_v4 = vld [vmem:[#allocation6 + $0x2d8] sm:$0xff]  ;;  %v760_v6 = vpack.c.bf16 %v155_v62, %v151_v61  ;;  %v159_v7 = vld [vmem:[#allocation6 + $0x2c0] sm:$0xff]  ;;  %v888_v8 = vpack.c.bf16 %v157_v1, %v153_v63 }
  0x45   :  { %875 = vmatprep.subr.bf16.mxu1 %v874_v28  ;;  %v166_v5 = vld [vmem:[#allocation6 + $0x2f8] sm:$0xff]  ;;  %v762_v9 = vpack.c.bf16 %v164_v3, %v160_v2  ;;  %v163_v10 = vld [vmem:[#allocation6 + $0x2e0] sm:$0xff]  ;;  %v161_v11 = vld [vmem:[#allocation6 + $0x2d0] sm:$0xff] }
  0x46   :  { %v165_v12 = vld [vmem:[#allocation6 + $0x2f0] sm:$0xff]  ;;  %v890_v13 = vpack.c.bf16 %v166_v5, %v162_v4  ;;  %v168_v14 = vld [vmem:[#allocation6 + $0x308] sm:$0xff]  ;;  %v170_v17 = vld [vmem:[#allocation6 + $0x318] sm:$0xff]  ;;  %v764_v19 = vpack.c.bf16 %v163_v10, %v159_v7 }
  0x47   :  { %749 = vmatpush1.bf16.msra.mxu0 %v748_v34  ;;  %v172_v15 = vld [vmem:[#allocation6 + $0x328] sm:$0xff]  ;;  %v174_v18 = vld [vmem:[#allocation6 + $0x338] sm:$0xff]  ;;  %v892_v20 = vpack.c.bf16 %v165_v12, %v161_v11  ;;  %v167_v22 = vld [vmem:[#allocation6 + $0x300] sm:$0xff] }
  0x48   :  { %877 = vmatpush1.bf16.msra.mxu1 %v876_v35  ;;  %751 = vmatprep.subr.bf16.mxu0 %v750_v36  ;;  %v64_v16 = vld [vmem:[#allocation3 + $0x8] sm:$0xff]  ;;  %v766_v21 = vpack.c.bf16 %v172_v15, %v168_v14  ;;  %v171_v23 = vld [vmem:[#allocation6 + $0x320] sm:$0xff]  ;;  %v169_v24 = vld [vmem:[#allocation6 + $0x310] sm:$0xff]  ;;  %v894_v25 = vpack.c.bf16 %v174_v18, %v170_v17 }
  0x49   :  { %879 = vmatprep.subr.bf16.mxu1 %v878_v40  ;;  %391 = vmatprep.mubr.f32.mxu0 %v64_v16  ;;  %v173_v26 = vld [vmem:[#allocation6 + $0x330] sm:$0xff]  ;;  %v176_v27 = vld [vmem:[#allocation6 + $0x348] sm:$0xff]  ;;  %v178_v29 = vld [vmem:[#allocation6 + $0x358] sm:$0xff]  ;;  %v768_v31 = vpack.c.bf16 %v171_v23, %v167_v22 }
  0x4a   :  { %545 = vmatprep.mubr.f32.mxu1 %v64_v16  ;;  %v180_v28 = vld [vmem:[#allocation6 + $0x368] sm:$0xff]  ;;  %v182_v30 = vld [vmem:[#allocation6 + $0x378] sm:$0xff]  ;;  %v896_v32 = vpack.c.bf16 %v173_v26, %v169_v24  ;;  %v175_v34 = vld [vmem:[#allocation6 + $0x340] sm:$0xff] }
  0x4b   :  { %753 = vmatpush1.bf16.msra.mxu0 %v752_v46  ;;  %v770_v33 = vpack.c.bf16 %v180_v28, %v176_v27  ;;  %v179_v35 = vld [vmem:[#allocation6 + $0x360] sm:$0xff]  ;;  %v177_v36 = vld [vmem:[#allocation6 + $0x350] sm:$0xff]  ;;  %v898_v37 = vpack.c.bf16 %v182_v30, %v178_v29  ;;  %v184_v39 = vld [vmem:[#allocation6 + $0x388] sm:$0xff] }
  0x4c   :  { %881 = vmatpush1.bf16.msra.mxu1 %v880_v47  ;;  %755 = vmatprep.subr.bf16.mxu0 %v754_v48  ;;  %v181_v38 = vld [vmem:[#allocation6 + $0x370] sm:$0xff]  ;;  %v188_v40 = vld [vmem:[#allocation6 + $0x3a8] sm:$0xff]  ;;  %v186_v41 = vld [vmem:[#allocation6 + $0x398] sm:$0xff]  ;;  %v772_v43 = vpack.c.bf16 %v179_v35, %v175_v34 }
  0x4d   :  { %883 = vmatprep.subr.bf16.mxu1 %v882_v52  ;;  %v190_v42 = vld [vmem:[#allocation6 + $0x3b8] sm:$0xff]  ;;  %v900_v44 = vpack.c.bf16 %v181_v38, %v177_v36  ;;  %v774_v45 = vpack.c.bf16 %v188_v40, %v184_v39  ;;  %v183_v46 = vld [vmem:[#allocation6 + $0x380] sm:$0xff]  ;;  %v185_v48 = vld [vmem:[#allocation6 + $0x390] sm:$0xff] }
  0x4e   :  { %v187_v47 = vld [vmem:[#allocation6 + $0x3a0] sm:$0xff]  ;;  %v902_v49 = vpack.c.bf16 %v190_v42, %v186_v41  ;;  %v189_v50 = vld [vmem:[#allocation6 + $0x3b0] sm:$0xff]  ;;  %v192_v51 = vld [vmem:[#allocation6 + $0x3c8] sm:$0xff] }
  0x4f   :  { %757 = vmatpush1.bf16.msra.mxu0 %v756_v58  ;;  %v196_v52 = vld [vmem:[#allocation6 + $0x3e8] sm:$0xff]  ;;  %v194_v53 = vld [vmem:[#allocation6 + $0x3d8] sm:$0xff]  ;;  %v776_v55 = vpack.c.bf16 %v187_v47, %v183_v46  ;;  %v904_v56 = vpack.c.bf16 %v189_v50, %v185_v48  ;;  %v191_v58 = vld [vmem:[#allocation6 + $0x3c0] sm:$0xff] }
  0x50   :  { %885 = vmatpush1.bf16.msra.mxu1 %v884_v59  ;;  %759 = vmatprep.subr.bf16.mxu0 %v758_v60  ;;  %v198_v54 = vld [vmem:[#allocation6 + $0x3f8] sm:$0xff]  ;;  %v778_v57 = vpack.c.bf16 %v196_v52, %v192_v51  ;;  %v195_v59 = vld [vmem:[#allocation6 + $0x3e0] sm:$0xff]  ;;  %v193_v60 = vld [vmem:[#allocation6 + $0x3d0] sm:$0xff] }
  0x51   :  { %887 = vmatprep.subr.bf16.mxu1 %v886_v0  ;;  %v906_v61 = vpack.c.bf16 %v198_v54, %v194_v53  ;;  %v197_v62 = vld [vmem:[#allocation6 + $0x3f0] sm:$0xff]  ;;  %v200_v63 = vld [vmem:[#allocation6 + $0x408] sm:$0xff]  ;;  %v202_v1 = vld [vmem:[#allocation6 + $0x418] sm:$0xff]  ;;  %v780_v3 = vpack.c.bf16 %v195_v59, %v191_v58 }
  0x52   :  { %v204_v0 = vld [vmem:[#allocation6 + $0x428] sm:$0xff]  ;;  %v206_v2 = vld [vmem:[#allocation6 + $0x438] sm:$0xff]  ;;  %v908_v4 = vpack.c.bf16 %v197_v62, %v193_v60  ;;  %v203_v7 = vld [vmem:[#allocation6 + $0x420] sm:$0xff] }
  0x53   :  { %761 = vmatpush1.bf16.msra.mxu0 %v760_v6  ;;  %v782_v5 = vpack.c.bf16 %v204_v0, %v200_v63  ;;  %v199_v6 = vld [vmem:[#allocation6 + $0x400] sm:$0xff]  ;;  %v205_v10 = vld [vmem:[#allocation6 + $0x430] sm:$0xff]  ;;  %v208_v11 = vld [vmem:[#allocation6 + $0x448] sm:$0xff] }
  0x54   :  { %889 = vmatpush1.bf16.msra.mxu1 %v888_v8  ;;  %763 = vmatprep.subr.bf16.mxu0 %v762_v9  ;;  %v201_v8 = vld [vmem:[#allocation6 + $0x410] sm:$0xff]  ;;  %v910_v9 = vpack.c.bf16 %v206_v2, %v202_v1  ;;  %v212_v12 = vld [vmem:[#allocation6 + $0x468] sm:$0xff]  ;;  %v214_v14 = vld [vmem:[#allocation6 + $0x478] sm:$0xff]  ;;  %v784_v16 = vpack.c.bf16 %v203_v7, %v199_v6 }
  0x55   :  { %891 = vmatprep.subr.bf16.mxu1 %v890_v13  ;;  %v210_v13 = vld [vmem:[#allocation6 + $0x458] sm:$0xff]  ;;  %v63_v15 = vld [vmem:[#allocation3] sm:$0xff]  ;;  %v912_v17 = vpack.c.bf16 %v205_v10, %v201_v8  ;;  %v786_v18 = vpack.c.bf16 %v212_v12, %v208_v11  ;;  %v213_v23 = vld [vmem:[#allocation6 + $0x470] sm:$0xff] }
  0x56   :  { %v914_v22 = vpack.c.bf16 %v214_v14, %v210_v13  ;;  %v216_v24 = vld [vmem:[#allocation6 + $0x488] sm:$0xff]  ;;  %v218_v26 = vld [vmem:[#allocation6 + $0x498] sm:$0xff]  ;;  %v221_v35 = vld [vmem:[#allocation6 + $0x4b0] sm:$0xff] }
  0x57   :  { %765 = vmatpush1.bf16.msra.mxu0 %v764_v19  ;;  %v207_v19 = vld [vmem:[#allocation6 + $0x440] sm:$0xff]  ;;  %v222_v27 = vld [vmem:[#allocation6 + $0x4b8] sm:$0xff]  ;;  %v224_v36 = vld [vmem:[#allocation6 + $0x4c8] sm:$0xff] }
  0x58   :  { %893 = vmatpush1.bf16.msra.mxu1 %v892_v20  ;;  %767 = vmatprep.subr.bf16.mxu0 %v766_v21  ;;  %v211_v20 = vld [vmem:[#allocation6 + $0x460] sm:$0xff]  ;;  %v209_v21 = vld [vmem:[#allocation6 + $0x450] sm:$0xff]  ;;  %v918_v34 = vpack.c.bf16 %v222_v27, %v218_v26  ;;  %v226_v38 = vld [vmem:[#allocation6 + $0x4d8] sm:$0xff] }
  0x59   :  { %895 = vmatprep.subr.bf16.mxu1 %v894_v25  ;;  %v220_v25 = vld [vmem:[#allocation6 + $0x4a8] sm:$0xff]  ;;  %v788_v28 = vpack.c.bf16 %v211_v20, %v207_v19  ;;  %v916_v29 = vpack.c.bf16 %v213_v23, %v209_v21  ;;  %v230_v39 = vld [vmem:[#allocation6 + $0x4f8] sm:$0xff]  ;;  %v229_v47 = vld [vmem:[#allocation6 + $0x4f0] sm:$0xff] }
  0x5a   :  { %v790_v30 = vpack.c.bf16 %v220_v25, %v216_v24  ;;  %v922_v46 = vpack.c.bf16 %v230_v39, %v226_v38  ;;  %v232_v48 = vld [vmem:[#allocation6 + $0x508] sm:$0xff]  ;;  %v234_v50 = vld [vmem:[#allocation6 + $0x518] sm:$0xff]  ;;  %v237_v59 = vld [vmem:[#allocation6 + $0x530] sm:$0xff] }
  0x5b   :  { %769 = vmatpush1.bf16.msra.mxu0 %v768_v31  ;;  %v215_v31 = vld [vmem:[#allocation6 + $0x480] sm:$0xff]  ;;  %v238_v51 = vld [vmem:[#allocation6 + $0x538] sm:$0xff]  ;;  %v240_v60 = vld [vmem:[#allocation6 + $0x548] sm:$0xff] }
  0x5c   :  { %897 = vmatpush1.bf16.msra.mxu1 %v896_v32  ;;  %771 = vmatprep.subr.bf16.mxu0 %v770_v33  ;;  %v219_v32 = vld [vmem:[#allocation6 + $0x4a0] sm:$0xff]  ;;  %v217_v33 = vld [vmem:[#allocation6 + $0x490] sm:$0xff]  ;;  %v926_v58 = vpack.c.bf16 %v238_v51, %v234_v50  ;;  %v242_v62 = vld [vmem:[#allocation6 + $0x558] sm:$0xff] }
  0x5d   :  { %899 = vmatprep.subr.bf16.mxu1 %v898_v37  ;;  %v228_v37 = vld [vmem:[#allocation6 + $0x4e8] sm:$0xff]  ;;  %v792_v40 = vpack.c.bf16 %v219_v32, %v215_v31  ;;  %v920_v41 = vpack.c.bf16 %v221_v35, %v217_v33  ;;  %v246_v63 = vld [vmem:[#allocation6 + $0x578] sm:$0xff]  ;;  %v245_v7 = vld [vmem:[#allocation6 + $0x570] sm:$0xff] }
  0x5e   :  { %v794_v42 = vpack.c.bf16 %v228_v37, %v224_v36  ;;  %v930_v6 = vpack.c.bf16 %v246_v63, %v242_v62  ;;  %v248_v8 = vld [vmem:[#allocation6 + $0x588] sm:$0xff]  ;;  %v250_v10 = vld [vmem:[#allocation6 + $0x598] sm:$0xff]  ;;  %v247_v14 = vld [vmem:[#allocation6 + $0x580] sm:$0xff] }
  0x5f   :  { %773 = vmatpush1.bf16.msra.mxu0 %v772_v43  ;;  %v223_v43 = vld [vmem:[#allocation6 + $0x4c0] sm:$0xff]  ;;  %v254_v11 = vld [vmem:[#allocation6 + $0x5b8] sm:$0xff]  ;;  %v68_v12 = vld [vmem:[#allocation3 + $0x28] sm:$0xff] }
  0x60   :  { %901 = vmatpush1.bf16.msra.mxu1 %v900_v44  ;;  %775 = vmatprep.subr.bf16.mxu0 %v774_v45  ;;  %v227_v44 = vld [vmem:[#allocation6 + $0x4e0] sm:$0xff]  ;;  %v225_v45 = vld [vmem:[#allocation6 + $0x4d0] sm:$0xff]  ;;  %v934_v21 = vpack.c.bf16 %v254_v11, %v250_v10  ;;  %v260_v23 = vld [vmem:[#allocation6 + $0x5e8] sm:$0xff] }
  0x61   :  { %903 = vmatprep.subr.bf16.mxu1 %v902_v49  ;;  %v236_v49 = vld [vmem:[#allocation6 + $0x528] sm:$0xff]  ;;  %v796_v52 = vpack.c.bf16 %v227_v44, %v223_v43  ;;  %v924_v53 = vpack.c.bf16 %v229_v47, %v225_v45  ;;  %v249_v19 = vld [vmem:[#allocation6 + $0x590] sm:$0xff]  ;;  %v66_v24 = vld [vmem:[#allocation3 + $0x18] sm:$0xff] }
  0x62   :  { %v798_v54 = vpack.c.bf16 %v236_v49, %v232_v48  ;;  %v253_v20 = vld [vmem:[#allocation6 + $0x5b0] sm:$0xff]  ;;  %v258_v25 = vld [vmem:[#allocation6 + $0x5d8] sm:$0xff]  ;;  %v259_v31 = vld [vmem:[#allocation6 + $0x5e0] sm:$0xff] }
  0x63   :  { %777 = vmatpush1.bf16.msra.mxu0 %v776_v55  ;;  %v231_v55 = vld [vmem:[#allocation6 + $0x500] sm:$0xff]  ;;  %v262_v26 = vld [vmem:[#allocation6 + $0x5f8] sm:$0xff]  ;;  %v257_v32 = vld [vmem:[#allocation6 + $0x5d0] sm:$0xff] }
  0x64   :  { %905 = vmatpush1.bf16.msra.mxu1 %v904_v56  ;;  %779 = vmatprep.subr.bf16.mxu0 %v778_v57  ;;  %v235_v56 = vld [vmem:[#allocation6 + $0x520] sm:$0xff]  ;;  %v233_v57 = vld [vmem:[#allocation6 + $0x510] sm:$0xff]  ;;  %v938_v33 = vpack.c.bf16 %v262_v26, %v258_v25  ;;  %v264_v35 = vld [vmem:[#allocation6 + $0x608] sm:$0xff] }
  0x65   :  { %907 = vmatprep.subr.bf16.mxu1 %v906_v61  ;;  %v244_v61 = vld [vmem:[#allocation6 + $0x568] sm:$0xff]  ;;  %v800_v0 = vpack.c.bf16 %v235_v56, %v231_v55  ;;  %v928_v1 = vpack.c.bf16 %v237_v59, %v233_v57  ;;  %v266_v37 = vld [vmem:[#allocation6 + $0x618] sm:$0xff]  ;;  %v267_v43 = vld [vmem:[#allocation6 + $0x620] sm:$0xff] }
  0x66   :  { %v802_v2 = vpack.c.bf16 %v244_v61, %v240_v60  ;;  %v268_v36 = vld [vmem:[#allocation6 + $0x628] sm:$0xff]  ;;  %v270_v38 = vld [vmem:[#allocation6 + $0x638] sm:$0xff]  ;;  %v265_v44 = vld [vmem:[#allocation6 + $0x610] sm:$0xff] }
  0x67   :  { %781 = vmatpush1.bf16.msra.mxu0 %v780_v3  ;;  %v239_v3 = vld [vmem:[#allocation6 + $0x540] sm:$0xff]  ;;  %v942_v45 = vpack.c.bf16 %v270_v38, %v266_v37  ;;  %v272_v47 = vld [vmem:[#allocation6 + $0x648] sm:$0xff]  ;;  %v274_v49 = vld [vmem:[#allocation6 + $0x658] sm:$0xff] }
  0x68   :  { %909 = vmatpush1.bf16.msra.mxu1 %v908_v4  ;;  %783 = vmatprep.subr.bf16.mxu0 %v782_v5  ;;  %v243_v4 = vld [vmem:[#allocation6 + $0x560] sm:$0xff]  ;;  %v241_v5 = vld [vmem:[#allocation6 + $0x550] sm:$0xff]  ;;  %v276_v48 = vld [vmem:[#allocation6 + $0x668] sm:$0xff] }
  0x69   :  { %911 = vmatprep.subr.bf16.mxu1 %v910_v9  ;;  %v252_v9 = vld [vmem:[#allocation6 + $0x5a8] sm:$0xff]  ;;  %v804_v13 = vpack.c.bf16 %v243_v4, %v239_v3  ;;  %v278_v50 = vld [vmem:[#allocation6 + $0x678] sm:$0xff]  ;;  %v275_v55 = vld [vmem:[#allocation6 + $0x660] sm:$0xff] }
  0x6a   :  { %392 = vmatmul.mubr.f32.vlgmr.msra.gmra.mrb[0].mxu0 %v63_v15  ;;  %v273_v56 = vld [vmem:[#allocation6 + $0x650] sm:$0xff]  ;;  %v946_v57 = vpack.c.bf16 %v278_v50, %v274_v49  ;;  %v280_v59 = vld [vmem:[#allocation6 + $0x688] sm:$0xff]  ;;  %v282_v61 = vld [vmem:[#allocation6 + $0x698] sm:$0xff] }
  0x6b   :  { %785 = vmatpush1.bf16.msra.mxu0 %v784_v16  ;;  %546 = vmatmul.mubr.f32.vlgmr.msra.gmra.mrb[0].mxu1 %v63_v15  ;;  %v67_v15 = vld [vmem:[#allocation3 + $0x20] sm:$0xff]  ;;  %v932_v16 = vpack.c.bf16 %v245_v7, %v241_v5  ;;  %v284_v60 = vld [vmem:[#allocation6 + $0x6a8] sm:$0xff]  ;;  %v286_v62 = vld [vmem:[#allocation6 + $0x6b8] sm:$0xff] }
  0x6c   :  { %913 = vmatpush1.bf16.msra.mxu1 %v912_v17  ;;  %787 = vmatprep.subr.bf16.mxu0 %v786_v18  ;;  %v806_v17 = vpack.c.bf16 %v252_v9, %v248_v8  ;;  %v251_v18 = vld [vmem:[#allocation6 + $0x5a0] sm:$0xff]  ;;  %v281_v4 = vld [vmem:[#allocation6 + $0x690] sm:$0xff]  ;;  %v950_v5 = vpack.c.bf16 %v286_v62, %v282_v61  ;;  %v288_v7 = vld [vmem:[#allocation6 + $0x6c8] sm:$0xff] }
  0x6d   :  { %915 = vmatprep.subr.bf16.mxu1 %v914_v22  ;;  %397 = vmatprep.mubr.f32.mxu0 %v68_v12  ;;  %v256_v22 = vld [vmem:[#allocation6 + $0x5c8] sm:$0xff]  ;;  %v808_v27 = vpack.c.bf16 %v251_v18, %v247_v14  ;;  %v283_v3 = vld [vmem:[#allocation6 + $0x6a0] sm:$0xff]  ;;  %v290_v9 = vld [vmem:[#allocation6 + $0x6d8] sm:$0xff] }
  0x6e   :  { %551 = vmatprep.mubr.f32.mxu1 %v68_v12  ;;  %398 = vmatmul.mubr.f32.gmra.mrb[2].mxu0 %v67_v15  ;;  %v292_v8 = vld [vmem:[#allocation6 + $0x6e8] sm:$0xff]  ;;  %v294_v10 = vld [vmem:[#allocation6 + $0x6f8] sm:$0xff]  ;;  %v287_v14 = vld [vmem:[#allocation6 + $0x6c0] sm:$0xff] }
  0x6f   :  { %789 = vmatpush1.bf16.msra.mxu0 %v788_v28  ;;  %552 = vmatmul.mubr.f32.gmra.mrb[2].mxu1 %v67_v15  ;;  %v936_v28 = vpack.c.bf16 %v253_v20, %v249_v19  ;;  %v291_v15 = vld [vmem:[#allocation6 + $0x6e0] sm:$0xff]  ;;  %v293_v18 = vld [vmem:[#allocation6 + $0x6f0] sm:$0xff]  ;;  %v296_v19 = vld [vmem:[#allocation6 + $0x708] sm:$0xff] }
  0x70   :  { %917 = vmatpush1.bf16.msra.mxu1 %v916_v29  ;;  %791 = vmatprep.subr.bf16.mxu0 %v790_v30  ;;  %v810_v29 = vpack.c.bf16 %v260_v23, %v256_v22  ;;  %v255_v30 = vld [vmem:[#allocation6 + $0x5c0] sm:$0xff]  ;;  %v300_v20 = vld [vmem:[#allocation6 + $0x728] sm:$0xff]  ;;  %v302_v22 = vld [vmem:[#allocation6 + $0x738] sm:$0xff]  ;;  %v828_v23 = vpack.c.bf16 %v291_v15, %v287_v14 }
  0x71   :  { %919 = vmatprep.subr.bf16.mxu1 %v918_v34  ;;  %468 = vmatprep.mubr.f32.mxu0 %v66_v24  ;;  %v261_v34 = vld [vmem:[#allocation6 + $0x5f0] sm:$0xff]  ;;  %v812_v39 = vpack.c.bf16 %v259_v31, %v255_v30  ;;  %v830_v25 = vpack.c.bf16 %v300_v20, %v296_v19  ;;  %v295_v26 = vld [vmem:[#allocation6 + $0x700] sm:$0xff]  ;;  %v304_v31 = vld [vmem:[#allocation6 + $0x748] sm:$0xff] }
  0x72   :  { %622 = vmatprep.mubr.f32.mxu1 %v66_v24  ;;  %v301_v30 = vld [vmem:[#allocation6 + $0x730] sm:$0xff]  ;;  %v303_v38 = vld [vmem:[#allocation6 + $0x740] sm:$0xff] }
  0x73   :  { %793 = vmatpush1.bf16.msra.mxu0 %v792_v40  ;;  %v940_v40 = vpack.c.bf16 %v261_v34, %v257_v32  ;;  %v308_v32 = vld [vmem:[#allocation6 + $0x768] sm:$0xff]  ;;  %v310_v34 = vld [vmem:[#allocation6 + $0x778] sm:$0xff]  ;;  %v311_v50 = vld [vmem:[#allocation6 + $0x780] sm:$0xff] }
  0x74   :  { %921 = vmatpush1.bf16.msra.mxu1 %v920_v41  ;;  %795 = vmatprep.subr.bf16.mxu0 %v794_v42  ;;  %v814_v41 = vpack.c.bf16 %v268_v36, %v264_v35  ;;  %v263_v42 = vld [vmem:[#allocation6 + $0x600] sm:$0xff]  ;;  %v834_v37 = vpack.c.bf16 %v308_v32, %v304_v31 }
  0x75   :  { %923 = vmatprep.subr.bf16.mxu1 %v922_v46  ;;  %v269_v46 = vld [vmem:[#allocation6 + $0x630] sm:$0xff]  ;;  %v816_v51 = vpack.c.bf16 %v267_v43, %v263_v42  ;;  %v312_v43 = vld [vmem:[#allocation6 + $0x788] sm:$0xff]  ;;  %v319_v62 = vld [vmem:[#allocation6 + $0x7c0] sm:$0xff] }
  0x76   :  { %v309_v42 = vld [vmem:[#allocation6 + $0x770] sm:$0xff] }
  0x77   :  { %797 = vmatpush1.bf16.msra.mxu0 %v796_v52  ;;  %v944_v52 = vpack.c.bf16 %v269_v46, %v265_v44  ;;  %v316_v44 = vld [vmem:[#allocation6 + $0x7a8] sm:$0xff]  ;;  %v318_v46 = vld [vmem:[#allocation6 + $0x7b8] sm:$0xff] }
  0x78   :  { %925 = vmatpush1.bf16.msra.mxu1 %v924_v53  ;;  %799 = vmatprep.subr.bf16.mxu0 %v798_v54  ;;  %v818_v53 = vpack.c.bf16 %v276_v48, %v272_v47  ;;  %v271_v54 = vld [vmem:[#allocation6 + $0x640] sm:$0xff]  ;;  %v838_v49 = vpack.c.bf16 %v316_v44, %v312_v43 }
  0x79   :  { %927 = vmatprep.subr.bf16.mxu1 %v926_v58  ;;  %v277_v58 = vld [vmem:[#allocation6 + $0x670] sm:$0xff]  ;;  %v820_v63 = vpack.c.bf16 %v275_v55, %v271_v54  ;;  %v320_v55 = vld [vmem:[#allocation6 + $0x7c8] sm:$0xff] }
  0x7a   :  { %v317_v54 = vld [vmem:[#allocation6 + $0x7b0] sm:$0xff] }
  0x7b   :  { %801 = vmatpush1.bf16.msra.mxu0 %v800_v0  ;;  %v948_v0 = vpack.c.bf16 %v277_v58, %v273_v56  ;;  %v324_v56 = vld [vmem:[#allocation6 + $0x7e8] sm:$0xff]  ;;  %v326_v58 = vld [vmem:[#allocation6 + $0x7f8] sm:$0xff] }
  0x7c   :  { %929 = vmatpush1.bf16.msra.mxu1 %v928_v1  ;;  %803 = vmatprep.subr.bf16.mxu0 %v802_v2  ;;  %v822_v1 = vpack.c.bf16 %v284_v60, %v280_v59  ;;  %v279_v2 = vld [vmem:[#allocation6 + $0x680] sm:$0xff]  ;;  %v842_v61 = vpack.c.bf16 %v324_v56, %v320_v55 }
  0x7d   :  { %931 = vmatprep.subr.bf16.mxu1 %v930_v6  ;;  %v285_v6 = vld [vmem:[#allocation6 + $0x6b0] sm:$0xff]  ;;  %v824_v11 = vpack.c.bf16 %v283_v3, %v279_v2 }
  0x7e   :  { %v952_v12 = vpack.c.bf16 %v285_v6, %v281_v4  ;;  %v325_v2 = vld [vmem:[#allocation6 + $0x7f0] sm:$0xff]  ;;  %v70_v6 = vld [vmem:[#allocation3 + $0x38] sm:$0xff] }
  0x7f   :  { %805 = vmatpush1.bf16.msra.mxu0 %v804_v13  ;;  %v826_v13 = vpack.c.bf16 %v292_v8, %v288_v7  ;;  %v69_v7 = vld [vmem:[#allocation3 + $0x30] sm:$0xff]  ;;  %v664_v8 = vlaneseq }
  0x80   :  { %933 = vmatpush1.bf16.msra.mxu1 %v932_v16  ;;  %807 = vmatprep.subr.bf16.mxu0 %v806_v17  ;;  %v289_v16 = vld [vmem:[#allocation6 + $0x6d0] sm:$0xff]  ;;  %v954_v17 = vpack.c.bf16 %v294_v10, %v290_v9 }
  0x81   :  { %935 = vmatprep.subr.bf16.mxu1 %v934_v21  ;;  %v298_v21 = vld [vmem:[#allocation6 + $0x718] sm:$0xff]  ;;  %v956_v24 = vpack.c.bf16 %v293_v18, %v289_v16  ;;  %v665_v9 = vshrl.u32 %v664_v8, 7 }
  0x83   :  { %809 = vmatpush1.bf16.msra.mxu0 %v808_v27  ;;  %v299_v27 = vld [vmem:[#allocation6 + $0x720] sm:$0xff]  ;;  %v666_v10 = vsub.s32 0, %v665_v9  ;;  %v678_v14 = vsub.s32 3, %v665_v9 }
  0x84   :  { %937 = vmatpush1.bf16.msra.mxu1 %v936_v28  ;;  %811 = vmatprep.subr.bf16.mxu0 %v810_v29  ;;  %v297_v28 = vld [vmem:[#allocation6 + $0x710] sm:$0xff]  ;;  %v958_v29 = vpack.c.bf16 %v302_v22, %v298_v21  ;;  %v832_v35 = vpack.c.bf16 %v299_v27, %v295_v26 }
  0x85   :  { %939 = vmatprep.subr.bf16.mxu1 %v938_v33  ;;  %v306_v33 = vld [vmem:[#allocation6 + $0x758] sm:$0xff]  ;;  %v960_v36 = vpack.c.bf16 %v301_v30, %v297_v28 }
  0x87   :  { %813 = vmatpush1.bf16.msra.mxu0 %v812_v39  ;;  %v307_v39 = vld [vmem:[#allocation6 + $0x760] sm:$0xff] }
  0x88   :  { %941 = vmatpush1.bf16.msra.mxu1 %v940_v40  ;;  %815 = vmatprep.subr.bf16.mxu0 %v814_v41  ;;  %v305_v40 = vld [vmem:[#allocation6 + $0x750] sm:$0xff]  ;;  %v962_v41 = vpack.c.bf16 %v310_v34, %v306_v33  ;;  %v836_v47 = vpack.c.bf16 %v307_v39, %v303_v38 }
  0x89   :  { %943 = vmatprep.subr.bf16.mxu1 %v942_v45  ;;  %v314_v45 = vld [vmem:[#allocation6 + $0x798] sm:$0xff]  ;;  %v964_v48 = vpack.c.bf16 %v309_v42, %v305_v40 }
  0x8b   :  { %817 = vmatpush1.bf16.msra.mxu0 %v816_v51  ;;  %v315_v51 = vld [vmem:[#allocation6 + $0x7a0] sm:$0xff] }
  0x8c   :  { %945 = vmatpush1.bf16.msra.mxu1 %v944_v52  ;;  %819 = vmatprep.subr.bf16.mxu0 %v818_v53  ;;  %v313_v52 = vld [vmem:[#allocation6 + $0x790] sm:$0xff]  ;;  %v966_v53 = vpack.c.bf16 %v318_v46, %v314_v45  ;;  %v840_v59 = vpack.c.bf16 %v315_v51, %v311_v50 }
  0x8d   :  { %947 = vmatprep.subr.bf16.mxu1 %v946_v57  ;;  %v322_v57 = vld [vmem:[#allocation6 + $0x7d8] sm:$0xff]  ;;  %v968_v60 = vpack.c.bf16 %v317_v54, %v313_v52 }
  0x8f   :  { %821 = vmatpush1.bf16.msra.mxu0 %v820_v63  ;;  %v323_v63 = vld [vmem:[#allocation6 + $0x7e0] sm:$0xff] }
  0x90   :  { %949 = vmatpush1.bf16.msra.mxu1 %v948_v0  ;;  %823 = vmatprep.subr.bf16.mxu0 %v822_v1  ;;  %v970_v0 = vpack.c.bf16 %v326_v58, %v322_v57  ;;  %v321_v1 = vld [vmem:[#allocation6 + $0x7d0] sm:$0xff]  ;;  %v844_v3 = vpack.c.bf16 %v323_v63, %v319_v62 }
  0x91   :  { %951 = vmatprep.subr.bf16.mxu1 %v950_v5  ;;  %v972_v4 = vpack.c.bf16 %v325_v2, %v321_v1  ;;  %v65_v5 = vld [vmem:[#allocation3 + $0x10] sm:$0xff] }
  0x93   :  { %825 = vmatpush1.bf16.msra.mxu0 %v824_v11  ;;  %v662_v11 = vld [vmem:[%s1134_s2] sm:$0xf]  ;;  %s1063_s2 = smov [#allocation8]  }
  0x94   :  { %953 = vmatpush1.bf16.msra.mxu1 %v952_v12  ;;  %827 = vmatprep.subr.bf16.mxu0 %v826_v13  ;;  %v674_v12 = vsub.s32 2, %v665_v9  ;;  %v670_v13 = vsub.s32 1, %v665_v9  ;;  %v667_v15 = vrot.slane %v662_v11, %v666_v10  ;;  %v679_v18 = vrot.slane %v662_v11, %v678_v14  ;;  %s705_s11 = sshll.u32 %s1063_s2, 4  ;;  %s706_s11 = int_to_ptr.vmem [resolvable:$true] %s705_s11 }
  0x95   :  { %955 = vmatprep.subr.bf16.mxu1 %v954_v17  ;;  %s1031_s12 = scalar_lea.vmem %s706_s11, 1024  ;;  %p1036_p3 = scmp.lt.s32.totalorder %s706_s11, %s706_s11 }
  0x96   :  { %v675_v16 = vrot.slane %v662_v11, %v674_v12  ;;  %v671_v17 = vrot.slane %v662_v11, %v670_v13  ;;  %p1032_p2 = scmp.ne.s32.totalorder %s706_s11, %s1031_s12  ;;  %p1037_p4 = scmp.lt.s32.totalorder %s1031_s12, %s1031_s12 }
  0x97   :  { %829 = vmatpush1.bf16.msra.mxu0 %v828_v23 }
  0x98   :  { %957 = vmatpush1.bf16.msra.mxu1 %v956_v24  ;;  %831 = vmatprep.subr.bf16.mxu0 %v830_v25  ;;  %p1038_p5 = por %p1037_p4, %p1036_p3 }
  0x99   :  { %959 = vmatprep.subr.bf16.mxu1 %v958_v29 }
  0x9a   :  { %p1039_p6 = pnand %p1038_p5, %p1032_p2 }
  0x9b   :  { %833 = vmatpush1.bf16.msra.mxu0 %v832_v35 }
  0x9c   :  { %961 = vmatpush1.bf16.msra.mxu1 %v960_v36  ;;  %835 = vmatprep.subr.bf16.mxu0 %v834_v37 }
  0x9d   :  { %963 = vmatprep.subr.bf16.mxu1 %v962_v41 }
  0x9f   :  { %837 = vmatpush1.bf16.msra.mxu0 %v836_v47 }
  0xa0   :  { %965 = vmatpush1.bf16.msra.mxu1 %v964_v48  ;;  %839 = vmatprep.subr.bf16.mxu0 %v838_v49 }
  0xa1   :  { %967 = vmatprep.subr.bf16.mxu1 %v966_v53 }
  0xa3   :  { %841 = vmatpush1.bf16.msra.mxu0 %v840_v59 }
  0xa4   :  { %969 = vmatpush1.bf16.msra.mxu1 %v968_v60  ;;  %843 = vmatprep.subr.bf16.mxu0 %v842_v61 }
  0xa5   :  { %971 = vmatprep.subr.bf16.mxu1 %v970_v0 }
  0xa7   :  { %845 = vmatpush1.bf16.msra.mxu0 %v844_v3 }
  0xa8   :  { %973 = vmatpush1.bf16.msra.mxu1 %v972_v4 }
  0xaa   :  { %469 = vmatmul.mubr.f32.vlgmr.msra.gmra.mrb[0].mxu0 %v65_v5 }
  0xab   :  { %623 = vmatmul.mubr.f32.vlgmr.msra.gmra.mrb[0].mxu1 %v65_v5  ;;  %474 = vmatprep.mubr.f32.mxu0 %v70_v6 }
  0xac   :  { %628 = vmatprep.mubr.f32.mxu1 %v70_v6 }
  0xae   :  { %475 = vmatmul.mubr.f32.gmra.mrb[2].mxu0 %v69_v7 }
  0xaf   :  { %629 = vmatmul.mubr.f32.gmra.mrb[2].mxu1 %v69_v7 }
 0x17d   :  { %v470_v19 = vpop.f32.mrb[0].mxu0 }
 0x17e   :  { %v684_v20 = vadd.f32 %v667_v15, %v470_v19  ;;  %v624_v21 = vpop.f32.mrb[0].mxu1  ;;  %v472_v22 = vpop.f32.mrb[1].mxu0 }
 0x17f   :  { %v686_v23 = vadd.f32 %v675_v16, %v624_v21  ;;  %v685_v24 = vadd.f32 %v671_v17, %v472_v22  ;;  %v626_v25 = vpop.f32.mrb[1].mxu1 }
 0x180   :  { %692 = vst [vmem:[#allocation8] sm:$0xff] %v684_v20  ;;  %v687_v26 = vadd.f32 %v679_v18, %v626_v25 }
 0x181   :  { %694 = vst [vmem:[#allocation8 + $0x10] sm:$0xff] %v686_v23  ;;  %693 = vst [vmem:[#allocation8 + $0x8] sm:$0xff] %v685_v24  ;;  %v476_v27 = vpop.f32.mrb[2].mxu0 }
 0x182   :  { %695 = vst [vmem:[#allocation8 + $0x18] sm:$0xff] %v687_v26  ;;  %v688_v28 = vadd.f32 %v667_v15, %v476_v27  ;;  %v630_v29 = vpop.f32.mrb[2].mxu1  ;;  %v478_v30 = vpop.f32.mrb[3].mxu0 }
 0x183   :  { %v690_v31 = vadd.f32 %v675_v16, %v630_v29  ;;  %v689_v32 = vadd.f32 %v671_v17, %v478_v30  ;;  %v632_v33 = vpop.f32.mrb[3].mxu1 }
 0x184   :  { %696 = vst [vmem:[#allocation8 + $0x20] sm:$0xff] %v688_v28  ;;  %v691_v34 = vadd.f32 %v679_v18, %v632_v33 }
 0x185   :  { %698 = vst [vmem:[#allocation8 + $0x30] sm:$0xff] %v690_v31  ;;  %697 = vst [vmem:[#allocation8 + $0x28] sm:$0xff] %v689_v32 }
 0x186   :  { %699 = vst [vmem:[#allocation8 + $0x38] sm:$0xff] %v691_v34 }
 0x187   :  { %1042 = shalt.err (!%p1039_p6)
}
 0x188   :  { %s1043_s15 = scalar_lea.hbm %s1135_s3, 1024 }
 0x189   :  { %p1044_p7 = scmp.ne.s32.totalorder %s1135_s3, %s1043_s15  ;;  %p1047_p8 = scmp.lt.u32.totalorder %s1043_s15, %s1135_s3 }
 0x18b   :  { %p1049_p9 = pnand %p1047_p8, %p1044_p7 }
 0x18d   :  { %1052 = shalt.err (!%p1049_p9)
}
 0x18e   :  { %711 = dma.vmem_to_hbm [thread:$0]  %s706_s11, 1024, %s1135_s3, [#allocation5], %s1060_s22, %s1060_s22, %s1061_s23  }
 0x18f   :  { %1057 = dma.done.wait [#allocation5], 1024  }
 0x190   :  { %1058 = vsyncadd [#allocation5], 4294966272 }
 0x191   :  { %715 = vsyncpa [#allocation4], 1 }
 0x192   :  { %716 = vsyncpa [#allocation7], 1 }
 0x193   :  { %717 = vsyncpa [#allocation5], 1 }

</bundles_post_ra>
